<compile_context>
chip_gen: v6e
topology: v6e:2x2x1
jax: 0.10.0
libtpu: 0.0.40
codegen_flags: <defaults>
</compile_context>

<pallas_src>
import functools

import jax
import jax.numpy as jnp
from jax import lax
from jax.experimental import pallas as pl
from jax.experimental.pallas import tpu as pltpu


# --------------------------------------------------------------------------- #
# Kernel: whole loss in one shot.
# --------------------------------------------------------------------------- #
def _trait_similarity_kernel(yp_ref, yt_ref, o_ref, *, delta, eps):
    # yp_ref / yt_ref: (M, N) — trait rows on sublanes, samples on lanes.
    yp = yp_ref[...]
    yt = yt_ref[...]
    m, _ = yt.shape

    row = lax.broadcasted_iota(jnp.int32, (m, m), 0)
    col = lax.broadcasted_iota(jnp.int32, (m, m), 1)
    eye = row == col
    # pairs visited by the PyTorch double loop: 1 <= j < k < M
    pair_mask = (row >= 1) & (col > row)

    # ---- Pearson correlation between y_true traits -------------------------
    yt_c = yt - jnp.mean(yt, axis=1, keepdims=True)                     # (M, N)
    g = lax.dot_general(yt_c, yt_c, (((1,), (1,)), ((), ())),
                        preferred_element_type=jnp.float32)             # (M, M)
    g_diag = jnp.where(eye, g, 0.0)
    std_row = jnp.sqrt(jnp.sum(g_diag, axis=1, keepdims=True))          # (M, 1)
    std_col = jnp.sqrt(jnp.sum(g_diag, axis=0, keepdims=True))          # (1, M)
    pcc = g / (std_row * std_col)

    # ---- Cosine similarity between y_pred traits ----------------------------
    p = lax.dot_general(yp, yp, (((1,), (1,)), ((), ())),
                        preferred_element_type=jnp.float32)             # (M, M)
    p_diag = jnp.where(eye, p, 0.0)
    nrm_row = jnp.sqrt(jnp.sum(p_diag, axis=1, keepdims=True))          # (M, 1)
    nrm_col = jnp.sqrt(jnp.sum(p_diag, axis=0, keepdims=True))          # (1, M)
    cos = p / jnp.maximum(nrm_row * nrm_col, eps)

    # ---- select pairs with pcc >= delta, average over ALL pairs --------------
    contrib = jnp.where(pair_mask & (pcc >= delta), 1.0 - cos, 0.0)     # (M, M)
    total = jnp.sum(jnp.sum(contrib, axis=1, keepdims=True),
                    axis=0, keepdims=True)                              # (1, 1)
    num_pairs = (m - 1) * (m - 2) // 2
    o_ref[...] = total * (1.0 / num_pairs)


def trait_similarity(y_pred, y_true, delta=0.7, eps=1e-8):
    """Pallas forward of TraitSimilarity. y_pred, y_true: (N, M) float32."""
    assert y_pred.shape == y_true.shape and y_true.ndim == 2
    _, m = y_true.shape
    assert m >= 3, "need at least 3 traits (otherwise the PyTorch module divides by 0)"

    # traits -> sublanes, samples -> lanes (cheap wrapper-side layout plumbing)
    yp_t = jnp.asarray(y_pred, jnp.float32).T
    yt_t = jnp.asarray(y_true, jnp.float32).T

    out = pl.pallas_call(
        functools.partial(_trait_similarity_kernel,
                          delta=float(delta), eps=float(eps)),
        out_shape=jax.ShapeDtypeStruct((1, 1), jnp.float32),
        in_specs=[pl.BlockSpec(memory_space=pltpu.MemorySpace.VMEM),
                  pl.BlockSpec(memory_space=pltpu.MemorySpace.VMEM)],
        out_specs=pl.BlockSpec(memory_space=pltpu.MemorySpace.VMEM),
    )(yp_t, yt_t)
    return out[0, 0]


# --------------------------------------------------------------------------- #
# Pure-JAX reference (mirrors the PyTorch double loop exactly).
# --------------------------------------------------------------------------- #
def _trait_similarity_ref(y_pred, y_true, delta=0.7, eps=1e-8):
    m = y_true.shape[1]
    total = jnp.float32(0.0)
    c = 0
    for j in range(1, m):
        for k in range(j + 1, m):
            xt, zt = y_true[:, j], y_true[:, k]
            dx, dz = xt - xt.mean(), zt - zt.mean()
            pcc = jnp.sum(dx * dz) / (
                jnp.sqrt(jnp.sum(dx * dx)) * jnp.sqrt(jnp.sum(dz * dz)))
            xp, zp = y_pred[:, j], y_pred[:, k]
            cos = jnp.sum(xp * zp) / jnp.maximum(
                jnp.sqrt(jnp.sum(xp * xp)) * jnp.sqrt(jnp.sum(zp * zp)), eps)
            total = total + jnp.where(pcc >= delta, 1.0 - cos, 0.0)
            c += 1
    return total / c


if __name__ == "__main__":
    N, M = 64, 9          # samples, traits
    delta = 0.7

    key = jax.random.PRNGKey(0)
    kb1, kb2, kn, kp = jax.random.split(key, 4)

    base1 = jax.random.normal(kb1, (N, 1), jnp.float32)
    base2 = jax.random.normal(kb2, (N, 1), jnp.float32)
    noise = jax.random.normal(kn, (N, M), jnp.float32)
    w1 = jnp.array([0, 1, 1, 0, 0, 1, 0, 0, 0], jnp.float32)[None, :]
    w2 = jnp.array([0, 0, 0, 1, 0, 0, 0, 1, 0], jnp.float32)[None, :]
    # traits {1,2,5} share base1, {3,7} share base2 (pcc ~ 0.998 >= delta);
    # the rest are independent noise (|pcc| << delta) -> both branches exercised.
    y_true = base1 * w1 + base2 * w2 + noise * (1.0 - 0.95 * (w1 + w2))
    y_pred = jax.random.normal(kp, (N, M), jnp.float32)

    loss = trait_similarity(y_pred, y_true, delta=delta)
    loss = jax.block_until_ready(loss)

    ref = _trait_similarity_ref(y_pred, y_true, delta=delta)
    assert loss.shape == ()
    assert jnp.allclose(loss, ref, rtol=1e-5, atol=1e-5), (loss, ref)

    print("KERNEL_OK")
</pallas_src>

<mosaic_0001>
module attributes {stable_mosaic.version = 11 : i64} {
  func.func @_trait_similarity_kernel(%arg0: memref<9x64xf32, #tpu.memory_space<vmem>>, %arg1: memref<9x64xf32, #tpu.memory_space<vmem>>, %arg2: memref<1x1xf32, #tpu.memory_space<vmem>>) attributes {dimension_semantics = [], scalar_prefetch = 0 : i64, scratch_operands = 0 : i64, tpu.core_type = #tpu.core_type<tc>} {
    %c0 = arith.constant 0 : index
    %c0_0 = arith.constant 0 : index
    %0 = vector.load %arg0[%c0, %c0_0] : memref<9x64xf32, #tpu.memory_space<vmem>>, vector<9x64xf32>
    %c0_1 = arith.constant 0 : index
    %c0_2 = arith.constant 0 : index
    %1 = vector.load %arg1[%c0_1, %c0_2] : memref<9x64xf32, #tpu.memory_space<vmem>>, vector<9x64xf32>
    %2 = tpu.iota {dimensions = array<i32: 0>} : vector<9x9xi32>
    %3 = tpu.iota {dimensions = array<i32: 1>} : vector<9x9xi32>
    %4 = arith.cmpi eq, %2, %3 : vector<9x9xi32>
    %c1_i32 = arith.constant 1 : i32
    %5 = vector.broadcast %c1_i32 : i32 to vector<9x9xi32>
    %6 = arith.cmpi sge, %2, %5 : vector<9x9xi32>
    %7 = arith.cmpi sgt, %3, %2 : vector<9x9xi32>
    %8 = arith.andi %6, %7 : vector<9x9xi1>
    %cst = arith.constant dense<0.000000e+00> : vector<9xf32>
    %9 = vector.multi_reduction <add>, %1, %cst [1] : vector<9x64xf32> to vector<9xf32>
    %10 = vector.shape_cast %9 : vector<9xf32> to vector<9x1xf32>
    %cst_3 = arith.constant 6.400000e+01 : f32
    %11 = vector.broadcast %cst_3 : f32 to vector<9x1xf32>
    %12 = arith.divf %10, %11 : vector<9x1xf32>
    %13 = vector.broadcast %12 : vector<9x1xf32> to vector<9x64xf32>
    %14 = arith.subf %1, %13 : vector<9x64xf32>
    %cst_4 = arith.constant dense<0.000000e+00> : vector<9x9xf32>
    %15 = tpu.matmul %14, %14, %cst_4 {dimension_numbers = #tpu.dot_dimension_numbers<[1], [1], [0], [0], [0, 0, 1, 0], [], []>} : vector<9x64xf32>, vector<9x64xf32>, vector<9x9xf32> -> vector<9x9xf32>
    %cst_5 = arith.constant 0.000000e+00 : f32
    %16 = vector.broadcast %cst_5 : f32 to vector<9x9xf32>
    %17 = arith.select %4, %15, %16 : vector<9x9xi1>, vector<9x9xf32>
    %cst_6 = arith.constant dense<0.000000e+00> : vector<9xf32>
    %18 = vector.multi_reduction <add>, %17, %cst_6 [1] : vector<9x9xf32> to vector<9xf32>
    %19 = vector.shape_cast %18 : vector<9xf32> to vector<9x1xf32>
    %20 = math.sqrt %19 : vector<9x1xf32>
    %cst_7 = arith.constant dense<0.000000e+00> : vector<9xf32>
    %21 = vector.multi_reduction <add>, %17, %cst_7 [0] : vector<9x9xf32> to vector<9xf32>
    %22 = vector.shape_cast %21 : vector<9xf32> to vector<1x9xf32>
    %23 = math.sqrt %22 : vector<1x9xf32>
    %24 = vector.broadcast %20 : vector<9x1xf32> to vector<9x9xf32>
    %25 = vector.broadcast %23 : vector<1x9xf32> to vector<9x9xf32>
    %26 = arith.mulf %24, %25 : vector<9x9xf32>
    %27 = arith.divf %15, %26 : vector<9x9xf32>
    %cst_8 = arith.constant dense<0.000000e+00> : vector<9x9xf32>
    %28 = tpu.matmul %0, %0, %cst_8 {dimension_numbers = #tpu.dot_dimension_numbers<[1], [1], [0], [0], [0, 0, 1, 0], [], []>} : vector<9x64xf32>, vector<9x64xf32>, vector<9x9xf32> -> vector<9x9xf32>
    %cst_9 = arith.constant 0.000000e+00 : f32
    %29 = vector.broadcast %cst_9 : f32 to vector<9x9xf32>
    %30 = arith.select %4, %28, %29 : vector<9x9xi1>, vector<9x9xf32>
    %cst_10 = arith.constant dense<0.000000e+00> : vector<9xf32>
    %31 = vector.multi_reduction <add>, %30, %cst_10 [1] : vector<9x9xf32> to vector<9xf32>
    %32 = vector.shape_cast %31 : vector<9xf32> to vector<9x1xf32>
    %33 = math.sqrt %32 : vector<9x1xf32>
    %cst_11 = arith.constant dense<0.000000e+00> : vector<9xf32>
    %34 = vector.multi_reduction <add>, %30, %cst_11 [0] : vector<9x9xf32> to vector<9xf32>
    %35 = vector.shape_cast %34 : vector<9xf32> to vector<1x9xf32>
    %36 = math.sqrt %35 : vector<1x9xf32>
    %37 = vector.broadcast %33 : vector<9x1xf32> to vector<9x9xf32>
    %38 = vector.broadcast %36 : vector<1x9xf32> to vector<9x9xf32>
    %39 = arith.mulf %37, %38 : vector<9x9xf32>
    %cst_12 = arith.constant 9.99999993E-9 : f32
    %40 = vector.broadcast %cst_12 : f32 to vector<9x9xf32>
    %41 = arith.maximumf %39, %40 : vector<9x9xf32>
    %42 = arith.divf %28, %41 : vector<9x9xf32>
    %cst_13 = arith.constant 0.699999988 : f32
    %43 = vector.broadcast %cst_13 : f32 to vector<9x9xf32>
    %44 = arith.cmpf oge, %27, %43 : vector<9x9xf32>
    %45 = arith.andi %8, %44 : vector<9x9xi1>
    %cst_14 = arith.constant 1.000000e+00 : f32
    %46 = vector.broadcast %cst_14 : f32 to vector<9x9xf32>
    %47 = arith.subf %46, %42 : vector<9x9xf32>
    %cst_15 = arith.constant 0.000000e+00 : f32
    %48 = vector.broadcast %cst_15 : f32 to vector<9x9xf32>
    %49 = arith.select %45, %47, %48 : vector<9x9xi1>, vector<9x9xf32>
    %cst_16 = arith.constant dense<0.000000e+00> : vector<9xf32>
    %50 = vector.multi_reduction <add>, %49, %cst_16 [1] : vector<9x9xf32> to vector<9xf32>
    %51 = vector.shape_cast %50 : vector<9xf32> to vector<9x1xf32>
    %cst_17 = arith.constant dense<0.000000e+00> : vector<1xf32>
    %52 = vector.multi_reduction <add>, %51, %cst_17 [0] : vector<9x1xf32> to vector<1xf32>
    %53 = vector.shape_cast %52 : vector<1xf32> to vector<1x1xf32>
    %cst_18 = arith.constant 0.0357142873 : f32
    %54 = vector.broadcast %cst_18 : f32 to vector<1x1xf32>
    %55 = arith.mulf %53, %54 : vector<1x1xf32>
    %c0_19 = arith.constant 0 : index
    %c0_20 = arith.constant 0 : index
    %56 = vector.load %arg2[%c0_19, %c0_20] : memref<1x1xf32, #tpu.memory_space<vmem>>, vector<1x1xf32>
    tpu.vector_store %arg2[%c0_19, %c0_20], %55 {strides = array<i32>} : memref<1x1xf32, #tpu.memory_space<vmem>>, vector<1x1xf32>,
    return
  }
}

</mosaic_0001>

<bundles_post_ra>
// kernel: tpu_custom_call.1
= control target key start
LH: loop header
LB: loop body
LE: loop exit
PB: predicated region body
PF: predicated region fallthrough
CT: control target
= control target key end

     0   :  { %7 = vsyncpa [#allocation3], 0  ;;  %s563_s0 = inlined_call_operand.hbm [shape: f32[9,64], index: 0, kind: input, shape index: {}]   ;;  %s564_s1 = inlined_call_operand.hbm [shape: f32[9,64], index: 1, kind: input, shape index: {}]   ;;  %s565_s2 = inlined_call_operand.hbm [shape: f32[1,1], index: 2, kind: output, shape index: {}]  }
   0x1   :  { %8 = vsyncpa [#allocation6], 0 }
   0x2   :  { %9 = vsyncpa [#allocation4], 0  ;;  %s483_s9 = smov [#allocation2]  }
   0x3   :  { %s15_s10 = sshll.u32 %s483_s9, 4  ;;  %s16_s10 = int_to_ptr.vmem [resolvable:$true] %s15_s10 }
   0x4   :  { %s425_s11 = scalar_lea.vmem %s16_s10, 256  ;;  %p430_p1 = scmp.lt.s32.totalorder %s16_s10, %s16_s10 }
   0x5   :  { %p426_p0 = scmp.ne.s32.totalorder %s16_s10, %s425_s11  ;;  %p431_p2 = scmp.lt.s32.totalorder %s425_s11, %s425_s11 }
   0x7   :  { %p432_p3 = por %p431_p2, %p430_p1 }
   0x9   :  { %p433_p4 = pnand %p432_p3, %p426_p0 }
   0xb   :  { %436 = shalt.err (!%p433_p4)
}
   0xc   :  { %s484_s12 = smov 128   ;;  %s485_s13 = smov 8  }
   0xd   :  { %21 = dma.hbm_to_vmem [thread:$0]  %s563_s0, 256, %s16_s10, [#allocation3], %s484_s12, %s484_s12, %s485_s13  }
   0xe   :  { %s486_s16 = smov [#allocation5]  }
   0xf   :  { %s27_s17 = sshll.u32 %s486_s16, 4  ;;  %s28_s17 = int_to_ptr.vmem [resolvable:$true] %s27_s17 }
  0x10   :  { %s445_s18 = scalar_lea.vmem %s28_s17, 256  ;;  %p450_p6 = scmp.lt.s32.totalorder %s28_s17, %s28_s17 }
  0x11   :  { %p446_p5 = scmp.ne.s32.totalorder %s28_s17, %s445_s18  ;;  %p451_p7 = scmp.lt.s32.totalorder %s445_s18, %s445_s18 }
  0x13   :  { %p452_p8 = por %p451_p7, %p450_p6 }
  0x15   :  { %p453_p9 = pnand %p452_p8, %p446_p5 }
  0x17   :  { %456 = shalt.err (!%p453_p9)
}
  0x18   :  { %33 = dma.hbm_to_vmem [thread:$0]  %s564_s1, 256, %s28_s17, [#allocation6], %s484_s12, %s484_s12, %s485_s13  }
  0x19   :  { %477 = dma.done.wait [#allocation3], 256  }
  0x1a   :  { %478 = vsyncadd [#allocation3], 4294967040 }
  0x1b   :  { %479 = dma.done.wait [#allocation6], 256  }
  0x1c   :  { %480 = vsyncadd [#allocation6], 4294967040  ;;  %vm57_vm0 = vcmask 523264   ;;  %vm61_vm1 = vcmask 516096   ;;  %v41_v0 = vld [vmem:[#allocation2 + $0x8] sm:$0x1]  ;;  %v44_v12 = vlaneseq }
  0x1d   :  { %v43_v1 = vld [vmem:[#allocation5 + $0x8] sm:$0x1]  ;;  %v40_v2 = vld [vmem:[#allocation2] sm:$0xff]  ;;  %385 = vmatprep.subr.msk.mxu1 %vm57_vm0, %v41_v0  ;;  %v42_v4 = vld [vmem:[#allocation5] sm:$0xff]  ;;  %vm157_vm3 = vcmask 65536   ;;  %vm153_vm5 = vcmask 72704  }
  0x1e   :  { %v62_v3 = vsel %vm61_vm1, %v43_v1, 0.0  ;;  %389 = vmatprep.mubr.msk.f32.mxu1 %vm57_vm0, %v40_v2  ;;  %386 = vmatpush3.xpose.msk.msra.mxu1 %vm57_vm0, %v41_v0  ;;  %v58_v5 = vsel %vm57_vm0, %v42_v4, 0.0  ;;  %v522_v13 = vshrl.u32 %v44_v12, 7  ;;  %v527_v15 = vand.u32 127, %v44_v12  ;;  %s487_s0 = smov [#allocation7]  }
  0x1f   :  { %63 = vadd.xlane.f32.xlu0 %v62_v3  ;;  %387 = vmatprep.subr.msk.mxu1 %vm57_vm0, %v40_v2  ;;  %s352_s1 = sshll.u32 %s487_s0, 4  ;;  %s353_s1 = int_to_ptr.vmem [resolvable:$true] %s352_s1 }
  0x20   :  { %v525_v14 = vadd.s32 8, %v522_v13  ;;  %vm49_vm4 = vcmp.eq.s32.totalorder %v522_v13, %v527_v15  ;;  %s457_s21 = scalar_lea.vmem %s353_s1, 16  ;;  %s461_s22 = scalar_lea.vmem %s353_s1, 32 }
  0x21   :  { %p458_p10 = scmp.ne.s32.totalorder %s353_s1, %s457_s21  ;;  %p462_p11 = scmp.lt.s32.totalorder %s353_s1, %s353_s1 }
  0x22   :  { %388 = vmatpush3.xpose.msk.msra.mxu1 %vm57_vm0, %v40_v2  ;;  %vm50_vm2 = vcmp.eq.s32.totalorder %v525_v14, %v527_v15  ;;  %p463_p12 = scmp.lt.s32.totalorder %s461_s22, %s457_s21 }
  0x23   :  { %59 = vadd.xlane.f32.xlu0 %v58_v5 }
  0x24   :  { %p464_p13 = por %p463_p12, %p462_p11 }
  0x25   :  { %390 = vmatmul.mubr.msk.f32.vlgmr.msra.gmra.mxu1 %vm57_vm0, %v41_v0 }
  0x26   :  { %p465_p0 = pnand %p464_p13, %p458_p10 }
  0xa8   :  { %v64_v6 = vpop.xlane.xlu0 %63 }
  0xa9   :  { %v67_v7 = vmul.f32 0.015625, %v64_v6 }
  0xab   :  { %v69_v8 = vsub.f32 %v43_v1, %v67_v7 }
  0xac   :  { %v60_v9 = vpop.xlane.xlu0 %59 }
  0xad   :  { %v66_v10 = vmul.f32 0.015625, %v60_v9  ;;  %378 = vmatprep.subr.msk.mxu0 %vm57_vm0, %v69_v8 }
  0xae   :  { %379 = vmatpush3.xpose.msk.msra.mxu0 %vm57_vm0, %v69_v8 }
  0xaf   :  { %v68_v11 = vsub.f32 %v42_v4, %v66_v10 }
  0xb1   :  { %380 = vmatprep.subr.msk.mxu0 %vm57_vm0, %v68_v11  ;;  %382 = vmatprep.mubr.msk.f32.mxu0 %vm57_vm0, %v68_v11 }
  0xb2   :  { %381 = vmatpush3.xpose.msk.msra.mxu0 %vm57_vm0, %v68_v11 }
  0xb5   :  { %383 = vmatmul.mubr.msk.f32.vlgmr.msra.gmra.mxu0 %vm57_vm0, %v69_v8 }
  0xe5   :  { %v531_v16 = vpop.f32.mrf.mxu1 }
  0xe6   :  { %v277_v17 = vsel %vm50_vm2, %v531_v16, 0.0 }
  0xe7   :  { %v281_v18 = vsel %vm157_vm3, %v277_v17, 0.0  ;;  %v537_v19 = vpop.f32.mrf.mxu1 }
  0xe8   :  { %282 = vadd.xlane.f32.xlu1 %v281_v18  ;;  %v276_v20 = vsel %vm49_vm4, %v537_v19, 0.0 }
  0xe9   :  { %v278_v21 = vsel %vm153_vm5, %v276_v20, 0.0 }
  0xea   :  { %v298_v22 = vadd.f32 %v281_v18, %v278_v21 }
  0xec   :  { %279 = vadd.xlane.f32.xlu1 %v278_v21  ;;  %v299_v30 = vrot.slane %v298_v22, 4 }
  0xee   :  { %v300_v31 = vadd.f32 %v299_v30, %v298_v22 }
  0xf0   :  { %v301_v32 = vrot.slane %v300_v31, 2 }
  0xf2   :  { %v302_v33 = vadd.f32 %v301_v32, %v300_v31 }
  0xf4   :  { %v303_v36 = vrot.slane %v302_v33, 1 }
  0xf6   :  { %v304_v38 = vadd.f32 %v303_v36, %v302_v33 }
  0xf8   :  { %vm307_vm8 = vcmp.eq.f32.partialorder %v304_v38, inf  ;;  %v310_v55 = vand.u32 2147483648, %v304_v38  ;;  %vm309_vm11 = vcmp.eq.f32.partialorder %v304_v38, 0.0 }
 0x171   :  { %v283_v35 = vpop.xlane.xlu1 %282 }
 0x172   :  { %397 = vrsqrt.f32 %v283_v35  ;;  %vm293_vm6 = vcmp.eq.f32.partialorder %v283_v35, inf  ;;  %v296_v50 = vand.u32 2147483648, %v283_v35  ;;  %vm295_vm9 = vcmp.eq.f32.partialorder %v283_v35, 0.0 }
 0x175   :  { %v541_v23 = vpop.f32.mrf.mxu0  ;;  %v280_v39 = vpop.xlane.xlu1 %279 }
 0x176   :  { %v152_v24 = vsel %vm50_vm2, %v541_v23, 0.0  ;;  %399 = vrsqrt.f32 %v280_v39  ;;  %vm286_vm7 = vcmp.eq.f32.partialorder %v280_v39, inf  ;;  %v289_v53 = vand.u32 2147483648, %v280_v39 }
 0x177   :  { %v544_v25 = vpop.f32.mrf.mxu0  ;;  %v158_v27 = vsel %vm157_vm3, %v152_v24, 0.0  ;;  %401 = vrsqrt.f32 %v304_v38  ;;  %vm288_vm10 = vcmp.eq.f32.partialorder %v280_v39, 0.0  ;;  %vm51_vm2 = vcmp.ge.s32.totalorder %v522_v13, 1 }
 0x178   :  { %v151_v26 = vsel %vm49_vm4, %v544_v25, 0.0  ;;  %159 = vadd.xlane.f32.xlu0 %v158_v27  ;;  %vm53_vm4 = vcmp.gt.s32.totalorder %v527_v15, %v522_v13 }
 0x179   :  { %v154_v28 = vsel %vm153_vm5, %v151_v26, 0.0 }
 0x17a   :  { %v175_v29 = vadd.f32 %v158_v27, %v154_v28  ;;  %155 = vadd.xlane.f32.xlu1 %v154_v28 }
 0x17c   :  { %v176_v34 = vrot.slane %v175_v29, 4 }
 0x17e   :  { %v177_v37 = vadd.f32 %v176_v34, %v175_v29 }
 0x17f   :  { %v398_v44 = vpop.eup %397 }
 0x180   :  { %v178_v40 = vrot.slane %v177_v37, 2  ;;  %v292_v47 = vmul.f32 %v398_v44, %v283_v35 }
 0x182   :  { %v179_v41 = vadd.f32 %v178_v40, %v177_v37  ;;  %v294_v52 = vsel %vm293_vm6, %v283_v35, %v292_v47  ;;  %vm54_vm6 = vcmp.gt.s32.totalorder %v527_v15, %v525_v14 }
 0x183   :  { %v400_v45 = vpop.eup %399  ;;  %v297_v58 = vsel %vm295_vm9, %v296_v50, %v294_v52 }
 0x184   :  { %v180_v42 = vrot.slane %v179_v41, 1  ;;  %v402_v46 = vpop.eup %401  ;;  %v285_v48 = vmul.f32 %v400_v45, %v280_v39 }
 0x185   :  { %v306_v49 = vmul.f32 %v402_v46, %v304_v38 }
 0x186   :  { %v181_v43 = vadd.f32 %v180_v42, %v179_v41  ;;  %v287_v56 = vsel %vm286_vm7, %v280_v39, %v285_v48  ;;  %vm55_vm7 = vmand %vm51_vm2, %vm53_vm4 }
 0x187   :  { %v308_v57 = vsel %vm307_vm8, %v304_v38, %v306_v49  ;;  %v290_v59 = vsel %vm288_vm10, %v289_v53, %v287_v56 }
 0x188   :  { %403 = vrsqrt.f32 %v181_v43  ;;  %v311_v60 = vsel %vm309_vm11, %v310_v55, %v308_v57  ;;  %vm184_vm12 = vcmp.eq.f32.partialorder %v181_v43, inf  ;;  %vm186_vm13 = vcmp.eq.f32.partialorder %v181_v43, 0.0 }
 0x189   :  { %v313_v61 = vmul.f32 %v311_v60, %v297_v58  ;;  %v312_v63 = vmul.f32 %v311_v60, %v290_v59  ;;  %v187_v7 = vand.u32 2147483648, %v181_v43 }
 0x18b   :  { %v315_v0 = vmax.f32 %v313_v61, 1e-08  ;;  %v314_v2 = vmax.f32 %v312_v63, 1e-08 }
 0x195   :  { %v404_v62 = vpop.eup %403 }
 0x196   :  { %v183_v1 = vmul.f32 %v404_v62, %v181_v43 }
 0x198   :  { %v185_v6 = vsel %vm184_vm12, %v181_v43, %v183_v1  ;;  %vm334_vm12 = vcmask 1040384  }
 0x199   :  { %v188_v17 = vsel %vm186_vm13, %v187_v7, %v185_v6  ;;  %vm344_vm13 = vcmask 0  }
 0x201   :  { %v160_v51 = vpop.xlane.xlu0 %159 }
 0x202   :  { %405 = vrsqrt.f32 %v160_v51  ;;  %vm170_vm14 = vcmp.eq.f32.partialorder %v160_v51, inf  ;;  %v173_v8 = vand.u32 2147483648, %v160_v51  ;;  %vm172_vm15 = vcmp.eq.f32.partialorder %v160_v51, 0.0 }
 0x203   :  { %v156_v54 = vpop.xlane.xlu1 %155 }
 0x204   :  { %407 = vrsqrt.f32 %v156_v54  ;;  %vm163_vm0 = vcmp.eq.f32.partialorder %v156_v54, inf  ;;  %v166_v11 = vand.u32 2147483648, %v156_v54  ;;  %vm165_vm1 = vcmp.eq.f32.partialorder %v156_v54, 0.0 }
 0x205   :  { %409 = vrcp.f32 %v315_v0 }
 0x206   :  { %411 = vrcp.f32 %v314_v2 }
 0x20f   :  { %v406_v3 = vpop.eup %405 }
 0x210   :  { %v169_v5 = vmul.f32 %v406_v3, %v160_v51 }
 0x211   :  { %v408_v4 = vpop.eup %407 }
 0x212   :  { %v162_v9 = vmul.f32 %v408_v4, %v156_v54  ;;  %v171_v10 = vsel %vm170_vm14, %v160_v51, %v169_v5  ;;  %v410_v24 = vpop.eup %409 }
 0x213   :  { %v174_v12 = vsel %vm172_vm15, %v173_v8, %v171_v10  ;;  %v412_v26 = vpop.eup %411  ;;  %v319_v27 = vmul.f32 %v410_v24, %v531_v16 }
 0x214   :  { %v164_v18 = vsel %vm163_vm0, %v156_v54, %v162_v9  ;;  %v190_v20 = vmul.f32 %v188_v17, %v174_v12  ;;  %v317_v29 = vmul.f32 %v412_v26, %v537_v19 }
 0x215   :  { %v167_v21 = vsel %vm165_vm1, %v166_v11, %v164_v18  ;;  %v325_v33 = vsub.f32 1.0, %v319_v27 }
 0x216   :  { %v189_v22 = vmul.f32 %v188_v17, %v167_v21  ;;  %413 = vrcp.f32 %v190_v20  ;;  %v324_v16 = vsub.f32 1.0, %v317_v29 }
 0x218   :  { %415 = vrcp.f32 %v189_v22 }
 0x223   :  { %v414_v28 = vpop.eup %413 }
 0x224   :  { %v194_v31 = vmul.f32 %v414_v28, %v541_v23 }
 0x225   :  { %v416_v30 = vpop.eup %415 }
 0x226   :  { %v192_v32 = vmul.f32 %v416_v30, %v544_v25  ;;  %vm321_vm8 = vcmp.ge.f32.partialorder %v194_v31, 0.7 }
 0x227   :  { %vm323_vm9 = vmand %vm54_vm6, %vm321_vm8 }
 0x228   :  { %vm320_vm10 = vcmp.ge.f32.partialorder %v192_v32, 0.7  ;;  %v327_v34 = vsel %vm323_vm9, %v325_v33, 0.0 }
 0x229   :  { %vm322_vm11 = vmand %vm55_vm7, %vm320_vm10  ;;  %v331_v13 = vsel %vm157_vm3, %v327_v34, 0.0 }
 0x22a   :  { %v326_v35 = vsel %vm322_vm11, %v324_v16, 0.0  ;;  %332 = vadd.xlane.f32.xlu0 %v331_v13 }
 0x22b   :  { %v328_v19 = vsel %vm153_vm5, %v326_v35, 0.0 }
 0x22c   :  { %329 = vadd.xlane.f32.xlu1 %v328_v19 }
 0x2b3   :  { %v333_v14 = vpop.xlane.xlu0 %332 }
 0x2b4   :  { %v335_v15 = vsel %vm334_vm12, %v333_v14, 0.0 }
 0x2b5   :  { %v330_v23 = vpop.xlane.xlu1 %329 }
 0x2b6   :  { %v336_v36 = vadd.f32 %v335_v15, %v330_v23 }
 0x2b8   :  { %v337_v25 = vrot.slane %v336_v36, 4 }
 0x2ba   :  { %v338_v37 = vadd.f32 %v337_v25, %v336_v36 }
 0x2bc   :  { %v339_v38 = vrot.slane %v338_v37, 2 }
 0x2be   :  { %v340_v39 = vadd.f32 %v339_v38, %v338_v37 }
 0x2c0   :  { %v341_v40 = vrot.slane %v340_v39, 1 }
 0x2c2   :  { %v342_v41 = vadd.f32 %v341_v40, %v340_v39 }
 0x2c4   :  { %v343_v42 = vmul.f32 0.035714287, %v342_v41 }
 0x2c6   :  { %345 = vst.msk [vmem:[#allocation7] sm:$0x1] %vm344_vm13, %v343_v42 }
 0x2c7   :  { %468 = shalt.err (!%p465_p0)
}
 0x2c8   :  { %355 = dma.vmem_to_hbm [thread:$0]  %s353_s1, 16, %s565_s2, [#allocation4]  }
 0x2c9   :  { %481 = dma.done.wait [#allocation4], 16  }
 0x2ca   :  { %482 = vsyncadd [#allocation4], 4294967280 }
 0x2cb   :  { %359 = vsyncpa [#allocation3], 1 }
 0x2cc   :  { %360 = vsyncpa [#allocation6], 1 }
 0x2cd   :  { %361 = vsyncpa [#allocation4], 1 }

</bundles_post_ra>
